<compile_context>
chip_gen: v7x
topology: tpu7x:2x2x1
jax: 0.10.0
libtpu: 0.0.40
codegen_flags: <defaults>
</compile_context>

<pallas_src>
import functools

import jax
import jax.numpy as jnp
from jax import lax
from jax.experimental import pallas as pl
from jax.experimental.pallas import tpu as pltpu

EPS = 1e-5
LANE = 128


def _round_up(v, m):
    return (v + m - 1) // m * m


def _pick_tile_n(n, max_tile=512):
    """Batch tile: <=512 rows, multiple of 16 (bf16 sublane pack), 128-aligned when large."""
    t = min(max_tile, _round_up(max(n, 16), 16))
    if t >= 128:
        t -= t % 128
    return max(t, 16)


def _vmem_limit_bytes():
    """~3/4 of physical VMEM, capped at 96 MiB (=> ~96 MiB on v5e/v6e, ~48 MiB on v7x)."""
    try:
        cap = int(getattr(pltpu.get_tpu_info(), "vmem_capacity_bytes"))
    except Exception:
        cap = 64 * 1024 * 1024
    return int(max(32 * 1024 * 1024, min((cap * 3) // 4, 96 * 1024 * 1024)))


# ----------------------------- kernels -----------------------------

def _lin_relu_stats_kernel(x_ref, w_ref, b_ref, h_ref, stats_ref, *, n_valid, need_mask):
    """h = relu(x @ W + b), stored bf16; write this tile's [sum, sum_sq] of the stored values."""
    h = jnp.dot(x_ref[...], w_ref[...], preferred_element_type=jnp.float32)
    h = jnp.maximum(h + b_ref[...], 0.0)
    h_bf = h.astype(jnp.bfloat16)
    h_ref[...] = h_bf                                   # bf16 store: half the HBM write
    hq = h_bf.astype(jnp.float32)                       # stats over the values BN1 will see
    if need_mask:                                       # static: only when batch was padded
        tile_n = hq.shape[0]
        row = pl.program_id(0) * tile_n + lax.broadcasted_iota(jnp.int32, (tile_n, 1), 0)
        hq = jnp.where(row < n_valid, hq, 0.0)
    stats_ref[0:1, :] = jnp.sum(hq, axis=0, keepdims=True)       # XLU reductions, no concat temp
    stats_ref[1:2, :] = jnp.sum(hq * hq, axis=0, keepdims=True)


def _bn_lin_relu_stats_kernel(h_ref, ss_ref, w_ref, b_ref, y_ref, stats_ref, *, n_valid, need_mask):
    """y = relu((h*scale + shift) @ W + b), stored f32; write this tile's [sum, sum_sq] of y."""
    hn = h_ref[...].astype(jnp.float32) * ss_ref[0:1, :] + ss_ref[1:2, :]   # fused BN affine (f32)
    y = jnp.dot(hn.astype(jnp.bfloat16), w_ref[...], preferred_element_type=jnp.float32)
    y = jnp.maximum(y + b_ref[...], 0.0)
    y_ref[...] = y                                      # kept f32 for the residual path
    yq = y
    if need_mask:
        tile_n = y.shape[0]
        row = pl.program_id(0) * tile_n + lax.broadcasted_iota(jnp.int32, (tile_n, 1), 0)
        yq = jnp.where(row < n_valid, y, 0.0)
    stats_ref[0:1, :] = jnp.sum(yq, axis=0, keepdims=True)
    stats_ref[1:2, :] = jnp.sum(yq * yq, axis=0, keepdims=True)


def _bn_residual_kernel(x_ref, y_ref, ss_ref, o_ref):
    """out = x + (y*scale + shift)."""
    o_ref[...] = x_ref[...] + (y_ref[...] * ss_ref[0:1, :] + ss_ref[1:2, :])


# ----------------------------- wrapper -----------------------------

def _fused_scale_shift(stats, gamma, beta, n):
    """BN affine from reduced [sum, sum_sq] (tiny (2,F) math, done in plain JAX)."""
    mean = stats[0] / n
    var = jnp.maximum(stats[1] / n - mean * mean, 0.0)   # biased variance, clamp cancellation
    scale = gamma * lax.rsqrt(var + EPS)
    shift = beta - mean * scale
    return jnp.stack([scale, shift], axis=0)             # packed (2, F) operand


def resblock_forward(x, params, *, tile_n=None):
    """x: (N, inp) float32.  params: PyTorch-layout weights (see init_params)."""
    n, inp = x.shape
    hid = params["w1"].shape[0]
    inp_p = _round_up(inp, LANE)
    hid_p = _round_up(hid, LANE)
    if tile_n is None:
        tile_n = _pick_tile_n(n)
    assert tile_n % 16 == 0, "bf16 blocks need tile_n to be a multiple of 16"
    n_pad = _round_up(n, tile_n)
    grid = (n_pad // tile_n,)
    nt = grid[0]
    need_mask = n_pad != n
    vmem_limit = _vmem_limit_bytes()
    f32, bf16 = jnp.float32, jnp.bfloat16

    # Zero-pad batch to the tile and features to lane-dense multiples of 128.
    # gamma padded with zeros keeps padded channels exactly zero through both BNs;
    # padded rows are masked out of the statistics and sliced off at the end.
    xp = jnp.pad(x.astype(f32), ((0, n_pad - n), (0, inp_p - inp)))
    xp_bf = xp.astype(bf16)                               # matmul-only copy: half the pass-1 DMA
    w1t = jnp.pad(params["w1"].T, ((0, inp_p - inp), (0, hid_p - hid))).astype(bf16)
    b1 = jnp.pad(params["b1"], (0, hid_p - hid)).reshape(1, hid_p).astype(f32)
    g1 = jnp.pad(params["g1"], (0, hid_p - hid)).astype(f32)
    be1 = jnp.pad(params["be1"], (0, hid_p - hid)).astype(f32)
    w2t = jnp.pad(params["w2"].T, ((0, hid_p - hid), (0, inp_p - inp))).astype(bf16)
    b2 = jnp.pad(params["b2"], (0, inp_p - inp)).reshape(1, inp_p).astype(f32)
    g2 = jnp.pad(params["g2"], (0, inp_p - inp)).astype(f32)
    be2 = jnp.pad(params["be2"], (0, inp_p - inp)).astype(f32)

    const = lambda i: (0, 0)          # resident operands: DMA'd once, reused every tile
    row = lambda i: (i, 0)            # batch-tiled operands
    part = lambda i: (i, 0, 0)        # per-tile partial stats -> batch axis stays "parallel"

    # TODO(synk): when n_pad*hid_p bf16 fits comfortably in VMEM, fuse passes 1-2 with a
    # persistent VMEM scratch for h (two-phase grid) so h never round-trips HBM.

    # ---- pass 1: h = relu(x @ W1 + b1) (bf16); per-tile [sum, sum_sq] partials of h ----
    h_pre, st1 = pl.pallas_call(
        functools.partial(_lin_relu_stats_kernel, n_valid=n, need_mask=need_mask),
        grid=grid,
        in_specs=[pl.BlockSpec((tile_n, inp_p), row),
                  pl.BlockSpec((inp_p, hid_p), const),
                  pl.BlockSpec((1, hid_p), const)],
        out_specs=[pl.BlockSpec((tile_n, hid_p), row),
                   pl.BlockSpec((None, 2, hid_p), part)],
        out_shape=(jax.ShapeDtypeStruct((n_pad, hid_p), bf16),
                   jax.ShapeDtypeStruct((nt, 2, hid_p), f32)),
        compiler_params=pltpu.CompilerParams(
            dimension_semantics=("parallel",), vmem_limit_bytes=vmem_limit),
        cost_estimate=pl.CostEstimate(
            flops=2 * n_pad * inp_p * hid_p, transcendentals=0,
            bytes_accessed=2 * n_pad * (inp_p + hid_p) + 2 * inp_p * hid_p
                           + 4 * hid_p + 8 * nt * hid_p),
    )(xp_bf, w1t, b1)

    ss1 = _fused_scale_shift(jnp.sum(st1, axis=0), g1, be1, n)

    # ---- pass 2: y = relu(BN1(h) @ W2 + b2) (f32); per-tile [sum, sum_sq] partials of y ----
    y_pre, st2 = pl.pallas_call(
        functools.partial(_bn_lin_relu_stats_kernel, n_valid=n, need_mask=need_mask),
        grid=grid,
        in_specs=[pl.BlockSpec((tile_n, hid_p), row),
                  pl.BlockSpec((2, hid_p), const),
                  pl.BlockSpec((hid_p, inp_p), const),
                  pl.BlockSpec((1, inp_p), const)],
        out_specs=[pl.BlockSpec((tile_n, inp_p), row),
                   pl.BlockSpec((None, 2, inp_p), part)],
        out_shape=(jax.ShapeDtypeStruct((n_pad, inp_p), f32),
                   jax.ShapeDtypeStruct((nt, 2, inp_p), f32)),
        compiler_params=pltpu.CompilerParams(
            dimension_semantics=("parallel",), vmem_limit_bytes=vmem_limit),
        cost_estimate=pl.CostEstimate(
            flops=2 * n_pad * hid_p * inp_p + 2 * n_pad * hid_p, transcendentals=0,
            bytes_accessed=2 * n_pad * hid_p + 4 * n_pad * inp_p + 2 * hid_p * inp_p
                           + 8 * hid_p + 4 * inp_p + 8 * nt * inp_p),
    )(h_pre, ss1, w2t, b2)

    ss2 = _fused_scale_shift(jnp.sum(st2, axis=0), g2, be2, n)

    # ---- pass 3: out = x + BN2(y); aliases the padded-x buffer only when it is a fresh pad ----
    io_alias = {0: 0} if (inp_p != inp or n_pad != n) else {}
    out_p = pl.pallas_call(
        _bn_residual_kernel,
        grid=grid,
        in_specs=[pl.BlockSpec((tile_n, inp_p), row),
                  pl.BlockSpec((tile_n, inp_p), row),
                  pl.BlockSpec((2, inp_p), const)],
        out_specs=pl.BlockSpec((tile_n, inp_p), row),
        out_shape=jax.ShapeDtypeStruct((n_pad, inp_p), f32),
        compiler_params=pltpu.CompilerParams(
            dimension_semantics=("parallel",), vmem_limit_bytes=vmem_limit),
        input_output_aliases=io_alias,
    )(xp, y_pre, ss2)

    return out_p[:n, :inp]


# ----------------------------- params & reference -----------------------------

def init_params(key, inp, hid):
    """Deterministic synthetic params in PyTorch layout (Linear.weight is (out, in))."""
    k1, k2, k3, k4 = jax.random.split(key, 4)
    return {
        "w1": jax.random.normal(k1, (hid, inp), jnp.float32) * 0.1,   # Linear(inp, hid)
        "b1": jax.random.normal(k2, (hid,), jnp.float32) * 0.1,
        "g1": jnp.ones((hid,), jnp.float32),                          # BatchNorm1d(hid)
        "be1": jnp.zeros((hid,), jnp.float32),
        "w2": jax.random.normal(k3, (inp, hid), jnp.float32) * 0.1,   # Linear(hid, inp)
        "b2": jax.random.normal(k4, (inp,), jnp.float32) * 0.1,
        "g2": jnp.ones((inp,), jnp.float32),                          # BatchNorm1d(inp)
        "be2": jnp.zeros((inp,), jnp.float32),
    }


def resblock_reference(x, p):
    """Pure-JAX reference with the same numerics as the kernels (bf16 matmul operands,
    f32 accumulation, bf16-stored h, f32 training-mode BatchNorm, biased variance)."""
    def bn(t, g, b):
        mu = t.mean(0)
        var = ((t - mu) ** 2).mean(0)
        return (t - mu) * lax.rsqrt(var + EPS) * g + b

    h = jnp.dot(x.astype(jnp.bfloat16), p["w1"].T.astype(jnp.bfloat16),
                preferred_element_type=jnp.float32) + p["b1"]
    h = jnp.maximum(h, 0.0).astype(jnp.bfloat16).astype(jnp.float32)   # matches bf16 h storage
    h = bn(h, p["g1"], p["be1"])
    y = jnp.dot(h.astype(jnp.bfloat16), p["w2"].T.astype(jnp.bfloat16),
                preferred_element_type=jnp.float32) + p["b2"]
    y = bn(jnp.maximum(y, 0.0), p["g2"], p["be2"])
    return x + y


if __name__ == "__main__":
    # N deliberately NOT a multiple of the tile -> exercises batch padding + stats masking,
    # and tile_n=16 -> 5 batch tiles, exercising the per-tile partial-stats reduction.
    N, INP, HID = 72, 16, 32
    key = jax.random.PRNGKey(0)
    kx, kp = jax.random.split(key)
    x = jax.random.normal(kx, (N, INP), jnp.float32)
    params = init_params(kp, INP, HID)

    fwd = jax.jit(functools.partial(resblock_forward, tile_n=16))
    out = jax.block_until_ready(fwd(x, params))

    ref = resblock_reference(x, params)
    assert out.shape == (N, INP)
    max_err = float(jnp.max(jnp.abs(out - ref)))
    assert jnp.allclose(out, ref, atol=2e-3, rtol=2e-3), f"mismatch vs reference: {max_err}"
    print("KERNEL_OK")
</pallas_src>

<mosaic_0001>
module attributes {stable_mosaic.version = 11 : i64} {
  func.func @_lin_relu_stats_kernel(%arg0: i32, %arg1: memref<16x128xbf16, #tpu.memory_space<vmem>>, %arg2: memref<128x128xbf16, #tpu.memory_space<vmem>>, %arg3: memref<1x128xf32, #tpu.memory_space<vmem>>, %arg4: memref<16x128xbf16, #tpu.memory_space<vmem>>, %arg5: memref<1x2x128xf32, #tpu.memory_space<vmem>>) attributes {dimension_semantics = [#tpu.dimension_semantics<parallel>], iteration_bounds = array<i64: 5>, scalar_prefetch = 0 : i64, scratch_operands = 0 : i64, tpu.core_type = #tpu.core_type<tc>, window_params = [{transform_indices = @transform_0, window_bounds = array<i64: 16, 128>}, {pipeline_mode = #tpu.pipeline_mode<synchronous>, transform_indices = @transform_1, window_bounds = array<i64: 128, 128>}, {pipeline_mode = #tpu.pipeline_mode<synchronous>, transform_indices = @transform_2, window_bounds = array<i64: 1, 128>}, {transform_indices = @transform_3, window_bounds = array<i64: 16, 128>}, {transform_indices = @transform_4, window_bounds = array<i64: 1, 2, 128>}]} {
    %c0 = arith.constant 0 : index
    %c0_0 = arith.constant 0 : index
    %0 = vector.load %arg1[%c0, %c0_0] : memref<16x128xbf16, #tpu.memory_space<vmem>>, vector<16x128xbf16>
    %c0_1 = arith.constant 0 : index
    %c0_2 = arith.constant 0 : index
    %1 = vector.load %arg2[%c0_1, %c0_2] : memref<128x128xbf16, #tpu.memory_space<vmem>>, vector<128x128xbf16>
    %cst = arith.constant dense<0.000000e+00> : vector<16x128xf32>
    %2 = tpu.matmul %0, %1, %cst {dimension_numbers = #tpu.dot_dimension_numbers<[1], [0], [0], [1], [0, 0, 1, 1], [], []>} : vector<16x128xbf16>, vector<128x128xbf16>, vector<16x128xf32> -> vector<16x128xf32>
    %c0_3 = arith.constant 0 : index
    %c0_4 = arith.constant 0 : index
    %3 = vector.load %arg3[%c0_3, %c0_4] : memref<1x128xf32, #tpu.memory_space<vmem>>, vector<1x128xf32>
    %4 = vector.broadcast %3 : vector<1x128xf32> to vector<16x128xf32>
    %5 = arith.addf %2, %4 : vector<16x128xf32>
    %cst_5 = arith.constant 0.000000e+00 : f32
    %6 = vector.broadcast %cst_5 : f32 to vector<16x128xf32>
    %7 = arith.maximumf %5, %6 : vector<16x128xf32>
    %8 = arith.truncf %7 : vector<16x128xf32> to vector<16x128xbf16>
    %c0_6 = arith.constant 0 : index
    %c0_7 = arith.constant 0 : index
    %9 = vector.load %arg4[%c0_6, %c0_7] : memref<16x128xbf16, #tpu.memory_space<vmem>>, vector<16x128xbf16>
    tpu.vector_store %arg4[%c0_6, %c0_7], %8 {strides = array<i32>} : memref<16x128xbf16, #tpu.memory_space<vmem>>, vector<16x128xbf16>,
    %10 = arith.extf %8 : vector<16x128xbf16> to vector<16x128xf32>
    %c16_i32 = arith.constant 16 : i32
    %11 = arith.muli %arg0, %c16_i32 : i32
    %12 = tpu.iota {dimensions = array<i32: 0>} : vector<16x1xi32>
    %13 = vector.broadcast %11 : i32 to vector<16x1xi32>
    %14 = arith.addi %13, %12 : vector<16x1xi32>
    %c72_i32 = arith.constant 72 : i32
    %15 = vector.broadcast %c72_i32 : i32 to vector<16x1xi32>
    %16 = arith.cmpi slt, %14, %15 : vector<16x1xi32>
    %cst_8 = arith.constant 0.000000e+00 : f32
    %17 = vector.shape_cast %16 : vector<16x1xi1> to vector<16x1xi1>
    %18 = vector.broadcast %17 : vector<16x1xi1> to vector<16x128xi1>
    %19 = vector.broadcast %cst_8 : f32 to vector<16x128xf32>
    %20 = arith.select %18, %10, %19 : vector<16x128xi1>, vector<16x128xf32>
    %cst_9 = arith.constant dense<0.000000e+00> : vector<128xf32>
    %21 = vector.multi_reduction <add>, %20, %cst_9 [0] : vector<16x128xf32> to vector<128xf32>
    %22 = vector.shape_cast %21 : vector<128xf32> to vector<1x128xf32>
    %c0_10 = arith.constant 0 : index
    %c0_11 = arith.constant 0 : index
    %c0_12 = arith.constant 0 : index
    %23 = vector.load %arg5[%c0_10, %c0_11, %c0_12] : memref<1x2x128xf32, #tpu.memory_space<vmem>>, vector<1x1x128xf32>
    %24 = vector.shape_cast %23 : vector<1x1x128xf32> to vector<1x128xf32>
    %25 = vector.shape_cast %22 : vector<1x128xf32> to vector<1x1x128xf32>
    tpu.vector_store %arg5[%c0_10, %c0_11, %c0_12], %25 {strides = array<i32>} : memref<1x2x128xf32, #tpu.memory_space<vmem>>, vector<1x1x128xf32>,
    %26 = arith.mulf %20, %20 : vector<16x128xf32>
    %cst_13 = arith.constant dense<0.000000e+00> : vector<128xf32>
    %27 = vector.multi_reduction <add>, %26, %cst_13 [0] : vector<16x128xf32> to vector<128xf32>
    %28 = vector.shape_cast %27 : vector<128xf32> to vector<1x128xf32>
    %c0_14 = arith.constant 0 : index
    %c1 = arith.constant 1 : index
    %c0_15 = arith.constant 0 : index
    %29 = vector.load %arg5[%c0_14, %c1, %c0_15] : memref<1x2x128xf32, #tpu.memory_space<vmem>>, vector<1x1x128xf32>
    %30 = vector.shape_cast %29 : vector<1x1x128xf32> to vector<1x128xf32>
    %31 = vector.shape_cast %28 : vector<1x128xf32> to vector<1x1x128xf32>
    tpu.vector_store %arg5[%c0_14, %c1, %c0_15], %31 {strides = array<i32>} : memref<1x2x128xf32, #tpu.memory_space<vmem>>, vector<1x1x128xf32>,
    return
  }
  func.func @transform_0(%arg0: i32) -> (i32, i32) {
    %c0_i32 = arith.constant 0 : i32
    %c0_i32_0 = arith.constant 0 : i32
    return %arg0, %c0_i32 : i32, i32
  }
  func.func @transform_1(%arg0: i32) -> (i32, i32) {
    %c0_i32 = arith.constant 0 : i32
    %c0_i32_0 = arith.constant 0 : i32
    %c0_i32_1 = arith.constant 0 : i32
    return %c0_i32, %c0_i32_0 : i32, i32
  }
  func.func @transform_2(%arg0: i32) -> (i32, i32) {
    %c0_i32 = arith.constant 0 : i32
    %c0_i32_0 = arith.constant 0 : i32
    %c0_i32_1 = arith.constant 0 : i32
    return %c0_i32, %c0_i32_0 : i32, i32
  }
  func.func @transform_3(%arg0: i32) -> (i32, i32) {
    %c0_i32 = arith.constant 0 : i32
    %c0_i32_0 = arith.constant 0 : i32
    return %arg0, %c0_i32 : i32, i32
  }
  func.func @transform_4(%arg0: i32) -> (i32, i32, i32) {
    %c0_i32 = arith.constant 0 : i32
    %c0_i32_0 = arith.constant 0 : i32
    %c0_i32_1 = arith.constant 0 : i32
    return %arg0, %c0_i32, %c0_i32_0 : i32, i32, i32
  }
}

module attributes {stable_mosaic.version = 11 : i64} {
  func.func @_bn_lin_relu_stats_kernel(%arg0: i32, %arg1: memref<16x128xbf16, #tpu.memory_space<vmem>>, %arg2: memref<2x128xf32, #tpu.memory_space<vmem>>, %arg3: memref<128x128xbf16, #tpu.memory_space<vmem>>, %arg4: memref<1x128xf32, #tpu.memory_space<vmem>>, %arg5: memref<16x128xf32, #tpu.memory_space<vmem>>, %arg6: memref<1x2x128xf32, #tpu.memory_space<vmem>>) attributes {dimension_semantics = [#tpu.dimension_semantics<parallel>], iteration_bounds = array<i64: 5>, scalar_prefetch = 0 : i64, scratch_operands = 0 : i64, tpu.core_type = #tpu.core_type<tc>, window_params = [{transform_indices = @transform_0, window_bounds = array<i64: 16, 128>}, {pipeline_mode = #tpu.pipeline_mode<synchronous>, transform_indices = @transform_1, window_bounds = array<i64: 2, 128>}, {pipeline_mode = #tpu.pipeline_mode<synchronous>, transform_indices = @transform_2, window_bounds = array<i64: 128, 128>}, {pipeline_mode = #tpu.pipeline_mode<synchronous>, transform_indices = @transform_3, window_bounds = array<i64: 1, 128>}, {transform_indices = @transform_4, window_bounds = array<i64: 16, 128>}, {transform_indices = @transform_5, window_bounds = array<i64: 1, 2, 128>}]} {
    %c0 = arith.constant 0 : index
    %c0_0 = arith.constant 0 : index
    %0 = vector.load %arg1[%c0, %c0_0] : memref<16x128xbf16, #tpu.memory_space<vmem>>, vector<16x128xbf16>
    %1 = arith.extf %0 : vector<16x128xbf16> to vector<16x128xf32>
    %c0_1 = arith.constant 0 : index
    %c0_2 = arith.constant 0 : index
    %2 = vector.load %arg2[%c0_1, %c0_2] : memref<2x128xf32, #tpu.memory_space<vmem>>, vector<1x128xf32>
    %3 = vector.broadcast %2 : vector<1x128xf32> to vector<16x128xf32>
    %4 = arith.mulf %1, %3 : vector<16x128xf32>
    %c1 = arith.constant 1 : index
    %c0_3 = arith.constant 0 : index
    %5 = vector.load %arg2[%c1, %c0_3] : memref<2x128xf32, #tpu.memory_space<vmem>>, vector<1x128xf32>
    %6 = vector.broadcast %5 : vector<1x128xf32> to vector<16x128xf32>
    %7 = arith.addf %4, %6 : vector<16x128xf32>
    %8 = arith.truncf %7 : vector<16x128xf32> to vector<16x128xbf16>
    %c0_4 = arith.constant 0 : index
    %c0_5 = arith.constant 0 : index
    %9 = vector.load %arg3[%c0_4, %c0_5] : memref<128x128xbf16, #tpu.memory_space<vmem>>, vector<128x128xbf16>
    %cst = arith.constant dense<0.000000e+00> : vector<16x128xf32>
    %10 = tpu.matmul %8, %9, %cst {dimension_numbers = #tpu.dot_dimension_numbers<[1], [0], [0], [1], [0, 0, 1, 1], [], []>} : vector<16x128xbf16>, vector<128x128xbf16>, vector<16x128xf32> -> vector<16x128xf32>
    %c0_6 = arith.constant 0 : index
    %c0_7 = arith.constant 0 : index
    %11 = vector.load %arg4[%c0_6, %c0_7] : memref<1x128xf32, #tpu.memory_space<vmem>>, vector<1x128xf32>
    %12 = vector.broadcast %11 : vector<1x128xf32> to vector<16x128xf32>
    %13 = arith.addf %10, %12 : vector<16x128xf32>
    %cst_8 = arith.constant 0.000000e+00 : f32
    %14 = vector.broadcast %cst_8 : f32 to vector<16x128xf32>
    %15 = arith.maximumf %13, %14 : vector<16x128xf32>
    %c0_9 = arith.constant 0 : index
    %c0_10 = arith.constant 0 : index
    %16 = vector.load %arg5[%c0_9, %c0_10] : memref<16x128xf32, #tpu.memory_space<vmem>>, vector<16x128xf32>
    tpu.vector_store %arg5[%c0_9, %c0_10], %15 {strides = array<i32>} : memref<16x128xf32, #tpu.memory_space<vmem>>, vector<16x128xf32>,
    %c16_i32 = arith.constant 16 : i32
    %17 = arith.muli %arg0, %c16_i32 : i32
    %18 = tpu.iota {dimensions = array<i32: 0>} : vector<16x1xi32>
    %19 = vector.broadcast %17 : i32 to vector<16x1xi32>
    %20 = arith.addi %19, %18 : vector<16x1xi32>
    %c72_i32 = arith.constant 72 : i32
    %21 = vector.broadcast %c72_i32 : i32 to vector<16x1xi32>
    %22 = arith.cmpi slt, %20, %21 : vector<16x1xi32>
    %cst_11 = arith.constant 0.000000e+00 : f32
    %23 = vector.shape_cast %22 : vector<16x1xi1> to vector<16x1xi1>
    %24 = vector.broadcast %23 : vector<16x1xi1> to vector<16x128xi1>
    %25 = vector.broadcast %cst_11 : f32 to vector<16x128xf32>
    %26 = arith.select %24, %15, %25 : vector<16x128xi1>, vector<16x128xf32>
    %cst_12 = arith.constant dense<0.000000e+00> : vector<128xf32>
    %27 = vector.multi_reduction <add>, %26, %cst_12 [0] : vector<16x128xf32> to vector<128xf32>
    %28 = vector.shape_cast %27 : vector<128xf32> to vector<1x128xf32>
    %c0_13 = arith.constant 0 : index
    %c0_14 = arith.constant 0 : index
    %c0_15 = arith.constant 0 : index
    %29 = vector.load %arg6[%c0_13, %c0_14, %c0_15] : memref<1x2x128xf32, #tpu.memory_space<vmem>>, vector<1x1x128xf32>
    %30 = vector.shape_cast %29 : vector<1x1x128xf32> to vector<1x128xf32>
    %31 = vector.shape_cast %28 : vector<1x128xf32> to vector<1x1x128xf32>
    tpu.vector_store %arg6[%c0_13, %c0_14, %c0_15], %31 {strides = array<i32>} : memref<1x2x128xf32, #tpu.memory_space<vmem>>, vector<1x1x128xf32>,
    %32 = arith.mulf %26, %26 : vector<16x128xf32>
    %cst_16 = arith.constant dense<0.000000e+00> : vector<128xf32>
    %33 = vector.multi_reduction <add>, %32, %cst_16 [0] : vector<16x128xf32> to vector<128xf32>
    %34 = vector.shape_cast %33 : vector<128xf32> to vector<1x128xf32>
    %c0_17 = arith.constant 0 : index
    %c1_18 = arith.constant 1 : index
    %c0_19 = arith.constant 0 : index
    %35 = vector.load %arg6[%c0_17, %c1_18, %c0_19] : memref<1x2x128xf32, #tpu.memory_space<vmem>>, vector<1x1x128xf32>
    %36 = vector.shape_cast %35 : vector<1x1x128xf32> to vector<1x128xf32>
    %37 = vector.shape_cast %34 : vector<1x128xf32> to vector<1x1x128xf32>
    tpu.vector_store %arg6[%c0_17, %c1_18, %c0_19], %37 {strides = array<i32>} : memref<1x2x128xf32, #tpu.memory_space<vmem>>, vector<1x1x128xf32>,
    return
  }
  func.func @transform_0(%arg0: i32) -> (i32, i32) {
    %c0_i32 = arith.constant 0 : i32
    %c0_i32_0 = arith.constant 0 : i32
    return %arg0, %c0_i32 : i32, i32
  }
  func.func @transform_1(%arg0: i32) -> (i32, i32) {
    %c0_i32 = arith.constant 0 : i32
    %c0_i32_0 = arith.constant 0 : i32
    %c0_i32_1 = arith.constant 0 : i32
    return %c0_i32, %c0_i32_0 : i32, i32
  }
  func.func @transform_2(%arg0: i32) -> (i32, i32) {
    %c0_i32 = arith.constant 0 : i32
    %c0_i32_0 = arith.constant 0 : i32
    %c0_i32_1 = arith.constant 0 : i32
    return %c0_i32, %c0_i32_0 : i32, i32
  }
  func.func @transform_3(%arg0: i32) -> (i32, i32) {
    %c0_i32 = arith.constant 0 : i32
    %c0_i32_0 = arith.constant 0 : i32
    %c0_i32_1 = arith.constant 0 : i32
    return %c0_i32, %c0_i32_0 : i32, i32
  }
  func.func @transform_4(%arg0: i32) -> (i32, i32) {
    %c0_i32 = arith.constant 0 : i32
    %c0_i32_0 = arith.constant 0 : i32
    return %arg0, %c0_i32 : i32, i32
  }
  func.func @transform_5(%arg0: i32) -> (i32, i32, i32) {
    %c0_i32 = arith.constant 0 : i32
    %c0_i32_0 = arith.constant 0 : i32
    %c0_i32_1 = arith.constant 0 : i32
    return %arg0, %c0_i32, %c0_i32_0 : i32, i32, i32
  }
}

module attributes {stable_mosaic.version = 11 : i64} {
  func.func @_bn_residual_kernel(%arg0: i32, %arg1: memref<16x128xf32, #tpu.memory_space<vmem>>, %arg2: memref<16x128xf32, #tpu.memory_space<vmem>>, %arg3: memref<2x128xf32, #tpu.memory_space<vmem>>, %arg4: memref<16x128xf32, #tpu.memory_space<vmem>>) attributes {dimension_semantics = [#tpu.dimension_semantics<parallel>], iteration_bounds = array<i64: 5>, scalar_prefetch = 0 : i64, scratch_operands = 0 : i64, tpu.core_type = #tpu.core_type<tc>, window_params = [{transform_indices = @transform_0, window_bounds = array<i64: 16, 128>}, {transform_indices = @transform_1, window_bounds = array<i64: 16, 128>}, {pipeline_mode = #tpu.pipeline_mode<synchronous>, transform_indices = @transform_2, window_bounds = array<i64: 2, 128>}, {transform_indices = @transform_3, window_bounds = array<i64: 16, 128>}]} {
    %c0 = arith.constant 0 : index
    %c0_0 = arith.constant 0 : index
    %0 = vector.load %arg1[%c0, %c0_0] : memref<16x128xf32, #tpu.memory_space<vmem>>, vector<16x128xf32>
    %c0_1 = arith.constant 0 : index
    %c0_2 = arith.constant 0 : index
    %1 = vector.load %arg2[%c0_1, %c0_2] : memref<16x128xf32, #tpu.memory_space<vmem>>, vector<16x128xf32>
    %c0_3 = arith.constant 0 : index
    %c0_4 = arith.constant 0 : index
    %2 = vector.load %arg3[%c0_3, %c0_4] : memref<2x128xf32, #tpu.memory_space<vmem>>, vector<1x128xf32>
    %3 = vector.broadcast %2 : vector<1x128xf32> to vector<16x128xf32>
    %4 = arith.mulf %1, %3 : vector<16x128xf32>
    %c1 = arith.constant 1 : index
    %c0_5 = arith.constant 0 : index
    %5 = vector.load %arg3[%c1, %c0_5] : memref<2x128xf32, #tpu.memory_space<vmem>>, vector<1x128xf32>
    %6 = vector.broadcast %5 : vector<1x128xf32> to vector<16x128xf32>
    %7 = arith.addf %4, %6 : vector<16x128xf32>
    %8 = arith.addf %0, %7 : vector<16x128xf32>
    %c0_6 = arith.constant 0 : index
    %c0_7 = arith.constant 0 : index
    %9 = vector.load %arg4[%c0_6, %c0_7] : memref<16x128xf32, #tpu.memory_space<vmem>>, vector<16x128xf32>
    tpu.vector_store %arg4[%c0_6, %c0_7], %8 {strides = array<i32>} : memref<16x128xf32, #tpu.memory_space<vmem>>, vector<16x128xf32>,
    return
  }
  func.func @transform_0(%arg0: i32) -> (i32, i32) {
    %c0_i32 = arith.constant 0 : i32
    %c0_i32_0 = arith.constant 0 : i32
    return %arg0, %c0_i32 : i32, i32
  }
  func.func @transform_1(%arg0: i32) -> (i32, i32) {
    %c0_i32 = arith.constant 0 : i32
    %c0_i32_0 = arith.constant 0 : i32
    return %arg0, %c0_i32 : i32, i32
  }
  func.func @transform_2(%arg0: i32) -> (i32, i32) {
    %c0_i32 = arith.constant 0 : i32
    %c0_i32_0 = arith.constant 0 : i32
    %c0_i32_1 = arith.constant 0 : i32
    return %c0_i32, %c0_i32_0 : i32, i32
  }
  func.func @transform_3(%arg0: i32) -> (i32, i32) {
    %c0_i32 = arith.constant 0 : i32
    %c0_i32_0 = arith.constant 0 : i32
    return %arg0, %c0_i32 : i32, i32
  }
}

</mosaic_0001>

<bundles_post_ra>
// kernel: resblock_forward.5
= control target key start
LH: loop header
LB: loop body
LE: loop exit
PB: predicated region body
PF: predicated region fallthrough
CT: control target
= control target key end

     0   :  { %s337_s12 = smov 0   ;;  %s363_s0 = inlined_call_operand.vmem [shape: f32[80,128], index: 0, kind: input, shape index: {}, may-alias: {0,3}]   ;;  %s364_s1 = inlined_call_operand.vmem [shape: f32[80,128], index: 1, kind: input, shape index: {}]   ;;  %s365_s2 = inlined_call_operand.vmem [shape: f32[2,128], index: 2, kind: input, shape index: {}]   ;;  %s366_s3 = inlined_call_operand.vmem [shape: f32[80,128], index: 3, kind: output, shape index: {}, may-alias: {0,3}]  }
   0x1 LB: > { %s286_s13 = sadd.s32 4294967295, %s315_s12   ;;  %p290_p0 = scmp.ge.s32.totalorder %s315_s12, 1  ;;  %s315_s12 = sphi %s337_s12, %s13_s12  }
   0x2   : > { %p149_p1 = scmp.lt.s32.totalorder %s315_s12, 6 }
   0x4   : > { %p150_p2 = pnand %p290_p0, %p149_p1 }
   0x5   : > { %s291_s14 = sshll.u32 (!%p150_p2), %s286_s13, 1  ;;  %v297_v0 = vld [vmem:[%s365_s2] ss:$0 sm:$0xff] (!%p150_p2)  ;;  %v298_v2 = vld [vmem:[%s365_s2 + $0x1] ss:$0 sm:$0xff] (!%p150_p2) }
   0x6   : > { %153 = sbr.rel (%p150_p2) target bundleno = 24 (0x18), region = 32  ;;  %p179_p3 = scmp.lt.s32.totalorder (!%p150_p2), %s291_s14, 9 }
   0xd   : > { %s368_s14 = smov (!%p179_p3, %s291_s14), 9 }
   0xe   : > { %s292_s15 = sshll.u32 %s368_s14, 3 }
   0xf   : > { %s182_s20 = scalar_lea.vmem %s363_s0, %s292_s15  ;;  %s188_s23 = scalar_lea.vmem %s364_s1, %s292_s15 }
  0x10   : > { %v198_v1 = vld [vmem:[%s188_s23] sm:$0xff]  ;;  %v199_v3 = vld [vmem:[%s188_s23 + $0x8] sm:$0xff]  ;;  %s194_s28 = scalar_lea.vmem %s366_s3, %s292_s15 }
  0x11   : > { %v205_v4 = vmul.f32 %v297_v0, %v198_v1  ;;  %v196_v5 = vld [vmem:[%s182_s20] sm:$0xff]  ;;  %v206_v6 = vmul.f32 %v297_v0, %v199_v3  ;;  %v197_v7 = vld [vmem:[%s182_s20 + $0x8] sm:$0xff] }
  0x13   : > { %v212_v8 = vadd.f32 %v298_v2, %v205_v4  ;;  %v213_v9 = vadd.f32 %v298_v2, %v206_v6 }
  0x15   : > { %v214_v10 = vadd.f32 %v212_v8, %v196_v5  ;;  %v215_v11 = vadd.f32 %v213_v9, %v197_v7 }
  0x17   : > { %216 = vst [vmem:[%s194_s28] sm:$0xff] %v214_v10  ;;  %217 = vst [vmem:[%s194_s28 + $0x8] sm:$0xff] %v215_v11 }
  0x18 PF: > { %s13_s12 = sadd.s32 1, %s315_s12  }
  0x19   : > { %p10_p4 = scmp.ge.s32.totalorder %s13_s12, 7  }
  0x1b   :  { %12 = sbr.rel (!%p10_p4) target bundleno = 1 (0x1), region = 65 }

// kernel: resblock_forward.3
= control target key start
LH: loop header
LB: loop body
LE: loop exit
PB: predicated region body
PF: predicated region fallthrough
CT: control target
= control target key end

     0   :  { %s582_s15 = smov 0   ;;  %s642_s0 = inlined_call_operand.vmem [shape: bf16[80,128], index: 0, kind: input, shape index: {}]   ;;  %s643_s1 = inlined_call_operand.vmem [shape: bf16[128,128], index: 1, kind: input, shape index: {}]   ;;  %s644_s2 = inlined_call_operand.vmem [shape: f32[1,128], index: 2, kind: input, shape index: {}]   ;;  %s645_s3 = inlined_call_operand.vmem [shape: bf16[80,128], index: 3, kind: output, shape index: {0}]   ;;  %s646_s4 = inlined_call_operand.vmem [shape: f32[5,2,128], index: 4, kind: output, shape index: {1}]  }
   0x1 LB: > { %s588_s16 = sadd.s32 4294967295, %s553_s15   ;;  %p471_p0 = scmp.ge.s32.totalorder %s553_s15, 1  ;;  %s553_s15 = sphi %s582_s15, %s15_s15  }
   0x2   : > { %p166_p1 = scmp.lt.s32.totalorder %s553_s15, 6 }
   0x4   : > { %p167_p2 = pnand %p471_p0, %p166_p1 }
   0x5   : > { %v538_v0 = vld [vmem:[%s643_s1] sm:$0xff] (!%p167_p2)   ;;  %v555_v1 = vmov (!%p167_p2), 0.0   ;;  %v539_v2 = vld [vmem:[%s643_s1 + $0x8] sm:$0xff] (!%p167_p2)   ;;  %vm556_vm0 = vmmov (!%p167_p2), 0   ;;  %s472_s21 = sshll.u32 (!%p167_p2), %s588_s16, 1  ;;  %v540_v3 = vld [vmem:[%s643_s1 + $0x10] sm:$0xff] (!%p167_p2)   ;;  %v348_v10 = vlaneseq (!%p167_p2) }
   0x6   : > { %170 = sbr.rel (%p167_p2) target bundleno = 278 (0x116), region = 32  ;;  %508 = vmatprep.subr.bf16.mxu0 (!%p167_p2), %v555_v1  ;;  %524 = vmatprep.mubr.msk.bf16.mxu0 (!%p167_p2), %vm556_vm0, %v555_v1  ;;  %p197_p3 = scmp.lt.s32.totalorder (!%p167_p2), %s472_s21, 9  ;;  %v541_v4 = vld [vmem:[%s643_s1 + $0x18] sm:$0xff] (!%p167_p2)   ;;  %v542_v5 = vld [vmem:[%s643_s1 + $0x20] sm:$0xff] (!%p167_p2)   ;;  %v543_v6 = vld [vmem:[%s643_s1 + $0x28] sm:$0xff] (!%p167_p2)  }
   0x7   : > { %509 = vmatpush3.bf16.msra.mxu0 (!%p167_p2), %v538_v0  ;;  %v544_v7 = vld [vmem:[%s643_s1 + $0x30] sm:$0xff] (!%p167_p2)   ;;  %v545_v8 = vld [vmem:[%s643_s1 + $0x38] sm:$0xff] (!%p167_p2)   ;;  %v349_v11 = vshrl.u32 (!%p167_p2), %v348_v10, 7  ;;  %v477_v12 = vld [vmem:[%s644_s2] ss:$0 sm:$0xff] (!%p167_p2)  ;;  %s489_s14 = sshll.u32 (!%p167_p2), %s588_s16, 4 }
   0x8   : > { %510 = vmatprep.subr.bf16.mxu0 (!%p167_p2), %v555_v1  ;;  %v351_v17 = vstv (!%p167_p2), %s489_s14  ;;  %p208_p4 = scmp.lt.s32.totalorder (!%p167_p2), %s588_s16, 4 }
   0x9   : > { %v350_v14 = vadd.s32 (!%p167_p2), 8, %v349_v11  ;;  %v352_v21 = vadd.s32 (!%p167_p2), %v351_v17, %v349_v11 }
   0xb   : > { %511 = vmatpush3.bf16.msra.mxu0 (!%p167_p2), %v539_v2  ;;  %v353_v22 = vadd.s32 (!%p167_p2), %v351_v17, %v350_v14  ;;  %vm354_vm1 = vcmp.lt.s32.totalorder (!%p167_p2), %v352_v21, 72 }
   0xc   : > { %512 = vmatprep.subr.bf16.mxu0 (!%p167_p2), %v555_v1 }
   0xd   : > { %s648_s21 = smov (!%p197_p3, %s472_s21), 9  ;;  %vm355_vm2 = vcmp.lt.s32.totalorder %v353_v22, 72  ;;  %s650_s16 = smov (!%p208_p4, %s588_s16), 4 }
   0xe   : > { %s473_s24 = sshll.u32 %s648_s21, 2  ;;  %s476_s20 = sshll.u32 %s650_s16, 1 }
   0xf   : > { %s200_s27 = scalar_lea.vmem %s642_s0, %s473_s24  ;;  %513 = vmatpush3.bf16.msra.mxu0 %v540_v3  ;;  %s206_s19 = scalar_lea.vmem %s645_s3, %s473_s24 }
  0x10   : > { %514 = vmatprep.subr.bf16.mxu0 %v555_v1  ;;  %v546_v9 = vld [vmem:[%s200_s27] sm:$0xff]   ;;  %s211_s23 = scalar_lea.vmem %s646_s4, %s476_s20 }
  0x13   : > { %515 = vmatpush3.bf16.msra.mxu0 %v541_v4 }
  0x14   : > { %516 = vmatprep.subr.bf16.mxu0 %v555_v1 }
  0x17   : > { %517 = vmatpush3.bf16.msra.mxu0 %v542_v5 }
  0x18   : > { %518 = vmatprep.subr.bf16.mxu0 %v555_v1 }
  0x1b   : > { %519 = vmatpush3.bf16.msra.mxu0 %v543_v6 }
  0x1c   : > { %520 = vmatprep.subr.bf16.mxu0 %v555_v1 }
  0x1f   : > { %521 = vmatpush3.bf16.msra.mxu0 %v544_v7 }
  0x20   : > { %522 = vmatprep.subr.bf16.mxu0 %v555_v1 }
  0x23   : > { %523 = vmatpush3.bf16.msra.mxu0 %v545_v8 }
  0x26   : > { %525 = vmatmul.mubr.bf16.vlgmr.msra.gmra.mrb[0].mxu0 %v546_v9 }
  0xf9   : > { %v326_v13 = vpop.f32.mrb[0].mxu0 }
  0xfa   : > { %v327_v15 = vadd.f32 %v477_v12, %v326_v13  ;;  %v526_v16 = vpop.f32.mrb[1].mxu0 }
  0xfb   : > { %v329_v18 = vpop.f32.mrb[2].mxu0 }
  0xfc   : > { %v330_v19 = vadd.f32 %v477_v12, %v329_v18  ;;  %v527_v20 = vpop.f32.mrb[3].mxu0  ;;  %v333_v23 = vmax.f32 %v327_v15, 0.0 }
  0xfe   : > { %v334_v24 = vmax.f32 %v330_v19, 0.0 }
 0x100   : > { %v335_v25 = vpack.c.bf16 %v334_v24, %v333_v23 }
 0x102   : > { %498 = vst [vmem:[%s206_s19] sm:$0xff] %v335_v25   ;;  %v345_v26 = vunpack.c.l.bf16 %v335_v25  ;;  %v346_v27 = vunpack.c.h.bf16 %v335_v25 }
 0x104   : > { %v360_v28 = vsel %vm354_vm1, %v345_v26, 0.0  ;;  %v361_v29 = vsel %vm355_vm2, %v346_v27, 0.0 }
 0x105   : > { %v362_v30 = vadd.f32 %v361_v29, %v360_v28  ;;  %v370_v31 = vmul.f32 %v360_v28, %v360_v28  ;;  %v371_v32 = vmul.f32 %v361_v29, %v361_v29 }
 0x107   : > { %v363_v33 = vrot.slane %v362_v30, 4  ;;  %v372_v34 = vadd.f32 %v371_v32, %v370_v31 }
 0x109   : > { %v364_v35 = vadd.f32 %v363_v33, %v362_v30  ;;  %v373_v36 = vrot.slane %v372_v34, 4 }
 0x10b   : > { %v365_v37 = vrot.slane %v364_v35, 2  ;;  %v374_v38 = vadd.f32 %v373_v36, %v372_v34 }
 0x10d   : > { %v366_v39 = vadd.f32 %v365_v37, %v364_v35  ;;  %v375_v40 = vrot.slane %v374_v38, 2 }
 0x10f   : > { %v367_v41 = vrot.slane %v366_v39, 1  ;;  %v376_v42 = vadd.f32 %v375_v40, %v374_v38 }
 0x111   : > { %v368_v43 = vadd.f32 %v367_v41, %v366_v39  ;;  %v377_v44 = vrot.slane %v376_v42, 1 }
 0x113   : > { %369 = vst [vmem:[%s211_s23] sm:$0x1] %v368_v43  ;;  %v378_v45 = vadd.f32 %v377_v44, %v376_v42 }
 0x115   : > { %379 = vst [vmem:[%s211_s23 + $0x1] sm:$0x1] %v378_v45 }
 0x116 PF: > { %s15_s15 = sadd.s32 1, %s553_s15  }
 0x117   : > { %p12_p5 = scmp.ge.s32.totalorder %s15_s15, 7  }
 0x119   :  { %14 = sbr.rel (!%p12_p5) target bundleno = 1 (0x1), region = 74 }

// kernel: resblock_forward.4
= control target key start
LH: loop header
LB: loop body
LE: loop exit
PB: predicated region body
PF: predicated region fallthrough
CT: control target
= control target key end

     0   :  { %s610_s18 = smov 0   ;;  %s673_s0 = inlined_call_operand.vmem [shape: bf16[80,128], index: 0, kind: input, shape index: {}]   ;;  %s674_s1 = inlined_call_operand.vmem [shape: f32[2,128], index: 1, kind: input, shape index: {}]   ;;  %s675_s2 = inlined_call_operand.vmem [shape: bf16[128,128], index: 2, kind: input, shape index: {}]   ;;  %s676_s3 = inlined_call_operand.vmem [shape: f32[1,128], index: 3, kind: input, shape index: {}]   ;;  %s677_s4 = inlined_call_operand.vmem [shape: f32[80,128], index: 4, kind: output, shape index: {0}]   ;;  %s678_s5 = inlined_call_operand.vmem [shape: f32[5,2,128], index: 5, kind: output, shape index: {1}]  }
   0x1 LB: > { %s616_s19 = sadd.s32 4294967295, %s576_s18   ;;  %p499_p0 = scmp.ge.s32.totalorder %s576_s18, 1  ;;  %s576_s18 = sphi %s610_s18, %s16_s18  }
   0x2   : > { %p191_p1 = scmp.lt.s32.totalorder %s576_s18, 6 }
   0x4   : > { %p192_p2 = pnand %p499_p0, %p191_p1 }
   0x5   : > { %v562_v0 = vld [vmem:[%s675_s2] sm:$0xff] (!%p192_p2)   ;;  %v578_v1 = vmov (!%p192_p2), 0.0   ;;  %v563_v2 = vld [vmem:[%s675_s2 + $0x8] sm:$0xff] (!%p192_p2)   ;;  %vm579_vm0 = vmmov (!%p192_p2), 0   ;;  %s500_s24 = sshll.u32 (!%p192_p2), %s616_s19, 1  ;;  %v564_v3 = vld [vmem:[%s675_s2 + $0x10] sm:$0xff] (!%p192_p2)   ;;  %v376_v19 = vlaneseq (!%p192_p2) }
   0x6   : > { %195 = sbr.rel (%p192_p2) target bundleno = 274 (0x112), region = 36  ;;  %532 = vmatprep.subr.bf16.mxu0 (!%p192_p2), %v578_v1  ;;  %548 = vmatprep.mubr.msk.bf16.mxu0 (!%p192_p2), %vm579_vm0, %v578_v1  ;;  %p224_p3 = scmp.lt.s32.totalorder (!%p192_p2), %s500_s24, 9  ;;  %v565_v4 = vld [vmem:[%s675_s2 + $0x18] sm:$0xff] (!%p192_p2)   ;;  %v566_v5 = vld [vmem:[%s675_s2 + $0x20] sm:$0xff] (!%p192_p2)   ;;  %v567_v9 = vld [vmem:[%s675_s2 + $0x28] sm:$0xff] (!%p192_p2)  }
   0x7   : > { %533 = vmatpush3.bf16.msra.mxu0 (!%p192_p2), %v562_v0  ;;  %v505_v10 = vld [vmem:[%s674_s1] ss:$0 sm:$0xff] (!%p192_p2)  ;;  %v568_v13 = vld [vmem:[%s675_s2 + $0x30] sm:$0xff] (!%p192_p2)   ;;  %v506_v14 = vld [vmem:[%s674_s1 + $0x1] ss:$0 sm:$0xff] (!%p192_p2)  ;;  %s516_s22 = sshll.u32 (!%p192_p2), %s616_s19, 4 }
   0x8   : > { %534 = vmatprep.subr.bf16.mxu0 (!%p192_p2), %v578_v1  ;;  %v569_v17 = vld [vmem:[%s675_s2 + $0x38] sm:$0xff] (!%p192_p2)   ;;  %v377_v20 = vshrl.u32 (!%p192_p2), %v376_v19, 7  ;;  %v379_v21 = vstv (!%p192_p2), %s516_s22  ;;  %v507_v23 = vld [vmem:[%s676_s3] ss:$0 sm:$0xff] (!%p192_p2)  ;;  %p235_p4 = scmp.lt.s32.totalorder (!%p192_p2), %s616_s19, 4 }
   0xa   : > { %v378_v22 = vadd.s32 (!%p192_p2), 8, %v377_v20  ;;  %v380_v24 = vadd.s32 (!%p192_p2), %v379_v21, %v377_v20 }
   0xb   : > { %535 = vmatpush3.bf16.msra.mxu0 (!%p192_p2), %v563_v2 }
   0xc   : > { %536 = vmatprep.subr.bf16.mxu0 (!%p192_p2), %v578_v1  ;;  %v381_v26 = vadd.s32 (!%p192_p2), %v379_v21, %v378_v22  ;;  %vm382_vm1 = vcmp.lt.s32.totalorder (!%p192_p2), %v380_v24, 72 }
   0xd   : > { %s680_s24 = smov (!%p224_p3, %s500_s24), 9  ;;  %s682_s19 = smov (!%p235_p4, %s616_s19), 4 }
   0xe   : > { %s501_s27 = sshll.u32 %s680_s24, 2  ;;  %s503_s26 = sshll.u32 %s680_s24, 3  ;;  %vm383_vm2 = vcmp.lt.s32.totalorder %v381_v26, 72 }
   0xf   : > { %537 = vmatpush3.bf16.msra.mxu0 %v564_v3  ;;  %s227_s7 = scalar_lea.vmem %s673_s0, %s501_s27  ;;  %s233_s29 = scalar_lea.vmem %s677_s4, %s503_s26 }
  0x10   : > { %538 = vmatprep.subr.bf16.mxu0 %v578_v1  ;;  %v520_v6 = vld [vmem:[%s227_s7] sm:$0xff]   ;;  %s504_s24 = sshll.u32 %s682_s19, 1 }
  0x11   : > { %v521_v7 = vunpack.c.l.bf16 %v520_v6  ;;  %v522_v8 = vunpack.c.h.bf16 %v520_v6  ;;  %s238_s7 = scalar_lea.vmem %s678_s5, %s504_s24 }
  0x13   : > { %539 = vmatpush3.bf16.msra.mxu0 %v565_v4  ;;  %v249_v11 = vmul.f32 %v521_v7, %v505_v10  ;;  %v250_v12 = vmul.f32 %v522_v8, %v505_v10 }
  0x14   : > { %540 = vmatprep.subr.bf16.mxu0 %v578_v1 }
  0x15   : > { %v256_v15 = vadd.f32 %v506_v14, %v249_v11  ;;  %v257_v16 = vadd.f32 %v506_v14, %v250_v12 }
  0x17   : > { %541 = vmatpush3.bf16.msra.mxu0 %v566_v5  ;;  %v258_v18 = vpack.c.bf16 %v257_v16, %v256_v15 }
  0x18   : > { %542 = vmatprep.subr.bf16.mxu0 %v578_v1 }
  0x1b   : > { %543 = vmatpush3.bf16.msra.mxu0 %v567_v9 }
  0x1c   : > { %544 = vmatprep.subr.bf16.mxu0 %v578_v1 }
  0x1f   : > { %545 = vmatpush3.bf16.msra.mxu0 %v568_v13 }
  0x20   : > { %546 = vmatprep.subr.bf16.mxu0 %v578_v1 }
  0x23   : > { %547 = vmatpush3.bf16.msra.mxu0 %v569_v17 }
  0x26   : > { %549 = vmatmul.mubr.bf16.vlgmr.msra.gmra.mrb[0].mxu0 %v258_v18 }
  0xf9   : > { %v364_v25 = vpop.f32.mrb[0].mxu0 }
  0xfa   : > { %v365_v27 = vadd.f32 %v507_v23, %v364_v25  ;;  %v550_v28 = vpop.f32.mrb[1].mxu0 }
  0xfb   : > { %v367_v29 = vpop.f32.mrb[2].mxu0 }
  0xfc   : > { %v371_v30 = vmax.f32 %v365_v27, 0.0  ;;  %v368_v31 = vadd.f32 %v507_v23, %v367_v29  ;;  %v551_v32 = vpop.f32.mrb[3].mxu0 }
  0xfe   : > { %373 = vst [vmem:[%s233_s29] sm:$0xff] %v371_v30  ;;  %v388_v33 = vsel %vm382_vm1, %v371_v30, 0.0  ;;  %v372_v34 = vmax.f32 %v368_v31, 0.0 }
  0xff   : > { %v398_v36 = vmul.f32 %v388_v33, %v388_v33 }
 0x100   : > { %374 = vst [vmem:[%s233_s29 + $0x8] sm:$0xff] %v372_v34  ;;  %v389_v35 = vsel %vm383_vm2, %v372_v34, 0.0 }
 0x101   : > { %v390_v37 = vadd.f32 %v389_v35, %v388_v33  ;;  %v399_v38 = vmul.f32 %v389_v35, %v389_v35 }
 0x103   : > { %v391_v39 = vrot.slane %v390_v37, 4  ;;  %v400_v40 = vadd.f32 %v399_v38, %v398_v36 }
 0x105   : > { %v392_v41 = vadd.f32 %v391_v39, %v390_v37  ;;  %v401_v42 = vrot.slane %v400_v40, 4 }
 0x107   : > { %v393_v43 = vrot.slane %v392_v41, 2  ;;  %v402_v44 = vadd.f32 %v401_v42, %v400_v40 }
 0x109   : > { %v394_v45 = vadd.f32 %v393_v43, %v392_v41  ;;  %v403_v46 = vrot.slane %v402_v44, 2 }
 0x10b   : > { %v395_v47 = vrot.slane %v394_v45, 1  ;;  %v404_v48 = vadd.f32 %v403_v46, %v402_v44 }
 0x10d   : > { %v396_v49 = vadd.f32 %v395_v47, %v394_v45  ;;  %v405_v50 = vrot.slane %v404_v48, 1 }
 0x10f   : > { %397 = vst [vmem:[%s238_s7] sm:$0x1] %v396_v49  ;;  %v406_v51 = vadd.f32 %v405_v50, %v404_v48 }
 0x111   : > { %407 = vst [vmem:[%s238_s7 + $0x1] sm:$0x1] %v406_v51 }
 0x112 PF: > { %s16_s18 = sadd.s32 1, %s576_s18  }
 0x113   : > { %p13_p5 = scmp.ge.s32.totalorder %s16_s18, 7  }
 0x115   :  { %15 = sbr.rel (!%p13_p5) target bundleno = 1 (0x1), region = 78 }

</bundles_post_ra>
